<compile_context>
chip_gen: v6e
topology: v6e:2x2x1
jax: 0.10.0
libtpu: 0.0.40
codegen_flags: <defaults>
</compile_context>

<pallas_src>
import jax
import jax.numpy as jnp
import numpy as np
from jax.experimental import pallas as pl
from jax.experimental.pallas import tpu as pltpu

EPS = 1e-5  # nn.GroupNorm default eps


def _silu(x):
    return x * jax.nn.sigmoid(x)


def _shift_lanes(x, d):
    # result[:, t] = x[:, t + d], zero outside [0, L).  x: (C, L), d static.
    C, L = x.shape
    if d == 0:
        return x
    z = jnp.zeros((C, abs(d)), x.dtype)
    if d > 0:
        return jnp.concatenate([x[:, d:], z], axis=1)
    return jnp.concatenate([z, x[:, :L + d]], axis=1)


def _conv1d_k3(a, w_ref, b, pad_l):
    # a: (Cin, L) activations; w_ref: Ref (3, Cout, Cin); b: (Cout, 1).
    Cout = w_ref.shape[1]
    L = a.shape[1]
    out = jnp.zeros((Cout, L), jnp.float32)
    for k in range(3):                       # static unrolled taps
        d = k - pad_l
        out = out + jnp.dot(w_ref[k], _shift_lanes(a, d),
                            preferred_element_type=jnp.float32)
    return out + b


def make_patcher_kernel(causal: bool):
    # Conv1d(kernel=3, stride=1, dilation=1): padding_total = 2, extra_padding = 0.
    pad_l = 2 if causal else 1

    def kernel(x_ref, scale_ref, shift_ref,
               gn1_w, gn1_b, w1, b1,
               gn2_w, gn2_b, w2, b2,
               wout, bout,
               o_ref):
        x = x_ref[0]                                   # (Cin, L), f32, channel-major

        # --- block1: GroupNorm(num_groups=1) -> SiLU -> Conv1d(k=3, "same") ---
        mu = jnp.mean(x)
        var = jnp.mean((x - mu) ** 2)
        xn = (x - mu) * jax.lax.rsqrt(var + EPS)
        xn = xn * gn1_w[...] + gn1_b[...]              # per-channel affine, (Cin,1) bcast
        h = _conv1d_k3(_silu(xn), w1, b1[...], pad_l)  # (Cout, L)

        # --- block2: GroupNorm(1) -> x*(scale+1)+shift -> SiLU -> Conv1d(k=3) ---
        mu2 = jnp.mean(h)
        var2 = jnp.mean((h - mu2) ** 2)
        hn = (h - mu2) * jax.lax.rsqrt(var2 + EPS)
        hn = hn * gn2_w[...] + gn2_b[...]
        hn = hn * (scale_ref[0] + 1.0) + shift_ref[0]  # FiLM (hoisted mapping matmul)
        h2 = _conv1d_k3(_silu(hn), w2, b2[...], pad_l)  # (Cout, L)

        # --- residual: 1x1 Conv1d (in_channels != out_channels path) ---
        res = jnp.dot(wout[...], x, preferred_element_type=jnp.float32) + bout[...]
        o_ref[0] = (h2 + res).astype(o_ref.dtype)

    return kernel


def patcher_forward(x, mapping, p, patch_size, causal=False):
    """x: (B, C_in, L) NCL, mapping: (B, F). Returns (B, (C_out//patch)*patch, L//patch)."""
    B, Cin, L = x.shape
    Cout = p["w1_pt"].shape[0]          # = out_channels // patch_size
    assert L % patch_size == 0

    f32 = lambda v: v.astype(jnp.float32)
    col = lambda v: v.reshape(-1, 1).astype(jnp.float32)

    # --- MappingToScaleShift hoisted out of the kernel (one batched XLA matmul). ---
    m = f32(mapping)
    ss = _silu(m) @ f32(p["wm_pt"]).T + f32(p["bm_pt"])     # (B, 2*Cout)
    scale = ss[:, :Cout, None]                               # (B, Cout, 1)
    shift = ss[:, Cout:, None]                               # (B, Cout, 1)

    # Repack PyTorch-layout conv weights for the channel-major kernel.
    w1 = jnp.transpose(f32(p["w1_pt"]), (2, 0, 1))           # (3, Cout, Cin)
    w2 = jnp.transpose(f32(p["w2_pt"]), (2, 0, 1))           # (3, Cout, Cout)
    wout = f32(p["wout_pt"][:, :, 0])                        # (Cout, Cin)

    weights = [col(p["gn1_w_pt"]), col(p["gn1_b_pt"]), w1, col(p["b1_pt"]),
               col(p["gn2_w_pt"]), col(p["gn2_b_pt"]), w2, col(p["b2_pt"]),
               wout, col(p["bout_pt"])]

    def full_spec(arr):
        nd = arr.ndim
        return pl.BlockSpec(arr.shape, lambda b, _nd=nd: (0,) * _nd)

    out = pl.pallas_call(
        make_patcher_kernel(causal),
        out_shape=jax.ShapeDtypeStruct((B, Cout, L), jnp.float32),
        grid=(B,),
        in_specs=[pl.BlockSpec((1, Cin, L), lambda b: (b, 0, 0)),    # x, native NCL
                  pl.BlockSpec((1, Cout, 1), lambda b: (b, 0, 0)),   # scale
                  pl.BlockSpec((1, Cout, 1), lambda b: (b, 0, 0))]   # shift
                 + [full_spec(w) for w in weights],
        out_specs=pl.BlockSpec((1, Cout, L), lambda b: (b, 0, 0)),
        compiler_params=pltpu.CompilerParams(
            dimension_semantics=("parallel",)),   # batch elems independent (megacore)
    )(f32(x), scale, shift, *weights)

    # rearrange 'b c (l p) -> b (c p) l' (layout glue, stays in XLA)
    y = out.reshape(B, Cout, L // patch_size, patch_size)
    y = jnp.transpose(y, (0, 1, 3, 2)).reshape(B, Cout * patch_size, L // patch_size)
    return y


# ---------------- pure-JAX reference (for correctness check) ----------------
def reference_patcher(x, mapping, p, patch_size, causal=False):
    silu = lambda t: t * jax.nn.sigmoid(t)

    def gn(t, w, b):  # GroupNorm(num_groups=1) on (B, C, L)
        mu = t.mean(axis=(1, 2), keepdims=True)
        var = ((t - mu) ** 2).mean(axis=(1, 2), keepdims=True)
        return (t - mu) / jnp.sqrt(var + EPS) * w[None, :, None] + b[None, :, None]

    def conv(t, w, b, caus):  # w: (Cout, Cin, K), PyTorch layout
        K = w.shape[-1]
        if K == 1:
            pad = ((0, 0),)
        else:
            pad = ((2, 0),) if caus else ((1, 1),)
        y = jax.lax.conv_general_dilated(t, w, window_strides=(1,), padding=pad,
                                         dimension_numbers=("NCH", "OIH", "NCH"))
        return y + b[None, :, None]

    h = conv(silu(gn(x, p["gn1_w_pt"], p["gn1_b_pt"])), p["w1_pt"], p["b1_pt"], causal)
    ss = silu(mapping) @ p["wm_pt"].T + p["bm_pt"]
    Cout = h.shape[1]
    scale, shift = ss[:, :Cout, None], ss[:, Cout:, None]
    h2 = gn(h, p["gn2_w_pt"], p["gn2_b_pt"]) * (scale + 1.0) + shift
    h2 = conv(silu(h2), p["w2_pt"], p["b2_pt"], causal)
    y = h2 + conv(x, p["wout_pt"], p["bout_pt"], False)
    B, C, L = y.shape
    y = y.reshape(B, C, L // patch_size, patch_size)
    y = jnp.transpose(y, (0, 1, 3, 2)).reshape(B, C * patch_size, L // patch_size)
    return y


if __name__ == "__main__":
    # Patcher(in_channels=4, out_channels=16, patch_size=2, context_mapping_features=8)
    B, Cin, L = 2, 4, 16
    out_channels, patch_size, F_ = 16, 2, 8
    Cout = out_channels // patch_size  # 8  (!= Cin -> to_out is a real 1x1 conv)

    key = jax.random.PRNGKey(0)
    ks = jax.random.split(key, 16)
    rn = lambda k, shape, s=0.1: jax.random.normal(k, shape, jnp.float32) * s

    params = dict(
        gn1_w_pt=1.0 + rn(ks[0], (Cin,)),
        gn1_b_pt=rn(ks[1], (Cin,)),
        w1_pt=rn(ks[2], (Cout, Cin, 3)),
        b1_pt=rn(ks[3], (Cout,)),
        wm_pt=rn(ks[4], (2 * Cout, F_)),
        bm_pt=rn(ks[5], (2 * Cout,)),
        gn2_w_pt=1.0 + rn(ks[6], (Cout,)),
        gn2_b_pt=rn(ks[7], (Cout,)),
        w2_pt=rn(ks[8], (Cout, Cout, 3)),
        b2_pt=rn(ks[9], (Cout,)),
        wout_pt=rn(ks[10], (Cout, Cin, 1)),
        bout_pt=rn(ks[11], (Cout,)),
    )
    x = jax.random.normal(ks[12], (B, Cin, L), jnp.float32)
    mapping = jax.random.normal(ks[13], (B, F_), jnp.float32)

    out = patcher_forward(x, mapping, params, patch_size, causal=False)
    out = jax.block_until_ready(out)

    ref = jax.block_until_ready(reference_patcher(x, mapping, params, patch_size, causal=False))
    assert out.shape == (B, Cout * patch_size, L // patch_size), out.shape
    np.testing.assert_allclose(np.asarray(out), np.asarray(ref), rtol=2e-3, atol=2e-3)

    print("KERNEL_OK")
</pallas_src>

<mosaic_0001>
module attributes {stable_mosaic.version = 11 : i64} {
  func.func @kernel(%arg0: i32, %arg1: memref<1x4x16xf32, #tpu.memory_space<vmem>>, %arg2: memref<1x8x1xf32, #tpu.memory_space<vmem>>, %arg3: memref<1x8x1xf32, #tpu.memory_space<vmem>>, %arg4: memref<4x1xf32, #tpu.memory_space<vmem>>, %arg5: memref<4x1xf32, #tpu.memory_space<vmem>>, %arg6: memref<3x8x4xf32, #tpu.memory_space<vmem>>, %arg7: memref<8x1xf32, #tpu.memory_space<vmem>>, %arg8: memref<8x1xf32, #tpu.memory_space<vmem>>, %arg9: memref<8x1xf32, #tpu.memory_space<vmem>>, %arg10: memref<3x8x8xf32, #tpu.memory_space<vmem>>, %arg11: memref<8x1xf32, #tpu.memory_space<vmem>>, %arg12: memref<8x4xf32, #tpu.memory_space<vmem>>, %arg13: memref<8x1xf32, #tpu.memory_space<vmem>>, %arg14: memref<1x8x16xf32, #tpu.memory_space<vmem>>) attributes {dimension_semantics = [#tpu.dimension_semantics<parallel>], iteration_bounds = array<i64: 2>, scalar_prefetch = 0 : i64, scratch_operands = 0 : i64, tpu.core_type = #tpu.core_type<tc>, window_params = [{transform_indices = @transform_0, window_bounds = array<i64: 1, 4, 16>}, {transform_indices = @transform_1, window_bounds = array<i64: 1, 8, 1>}, {transform_indices = @transform_2, window_bounds = array<i64: 1, 8, 1>}, {pipeline_mode = #tpu.pipeline_mode<synchronous>, transform_indices = @transform_3, window_bounds = array<i64: 4, 1>}, {pipeline_mode = #tpu.pipeline_mode<synchronous>, transform_indices = @transform_4, window_bounds = array<i64: 4, 1>}, {pipeline_mode = #tpu.pipeline_mode<synchronous>, transform_indices = @transform_5, window_bounds = array<i64: 3, 8, 4>}, {pipeline_mode = #tpu.pipeline_mode<synchronous>, transform_indices = @transform_6, window_bounds = array<i64: 8, 1>}, {pipeline_mode = #tpu.pipeline_mode<synchronous>, transform_indices = @transform_7, window_bounds = array<i64: 8, 1>}, {pipeline_mode = #tpu.pipeline_mode<synchronous>, transform_indices = @transform_8, window_bounds = array<i64: 8, 1>}, {pipeline_mode = #tpu.pipeline_mode<synchronous>, transform_indices = @transform_9, window_bounds = array<i64: 3, 8, 8>}, {pipeline_mode = #tpu.pipeline_mode<synchronous>, transform_indices = @transform_10, window_bounds = array<i64: 8, 1>}, {pipeline_mode = #tpu.pipeline_mode<synchronous>, transform_indices = @transform_11, window_bounds = array<i64: 8, 4>}, {pipeline_mode = #tpu.pipeline_mode<synchronous>, transform_indices = @transform_12, window_bounds = array<i64: 8, 1>}, {transform_indices = @transform_13, window_bounds = array<i64: 1, 8, 16>}]} {
    %c0 = arith.constant 0 : index
    %c0_0 = arith.constant 0 : index
    %c0_1 = arith.constant 0 : index
    %0 = vector.load %arg1[%c0, %c0_0, %c0_1] : memref<1x4x16xf32, #tpu.memory_space<vmem>>, vector<1x4x16xf32>
    %1 = vector.shape_cast %0 : vector<1x4x16xf32> to vector<4x16xf32>
    %2 = vector.shape_cast %1 : vector<4x16xf32> to vector<1x4x16xf32>
    %cst = arith.constant dense<0.000000e+00> : vector<1xf32>
    %3 = vector.multi_reduction <add>, %2, %cst [1, 2] : vector<1x4x16xf32> to vector<1xf32>
    %4 = vector.shape_cast %3 : vector<1xf32> to vector<1x1x1xf32>
    %5 = vector.extract %4[0, 0, 0] : f32 from vector<1x1x1xf32>
    %cst_2 = arith.constant 6.400000e+01 : f32
    %6 = arith.divf %5, %cst_2 : f32
    %7 = vector.broadcast %6 : f32 to vector<4x16xf32>
    %8 = arith.subf %1, %7 : vector<4x16xf32>
    %9 = arith.mulf %8, %8 : vector<4x16xf32>
    %10 = vector.shape_cast %9 : vector<4x16xf32> to vector<1x4x16xf32>
    %cst_3 = arith.constant dense<0.000000e+00> : vector<1xf32>
    %11 = vector.multi_reduction <add>, %10, %cst_3 [1, 2] : vector<1x4x16xf32> to vector<1xf32>
    %12 = vector.shape_cast %11 : vector<1xf32> to vector<1x1x1xf32>
    %13 = vector.extract %12[0, 0, 0] : f32 from vector<1x1x1xf32>
    %cst_4 = arith.constant 6.400000e+01 : f32
    %14 = arith.divf %13, %cst_4 : f32
    %15 = vector.broadcast %6 : f32 to vector<4x16xf32>
    %16 = arith.subf %1, %15 : vector<4x16xf32>
    %cst_5 = arith.constant 9.99999974E-6 : f32
    %17 = arith.addf %14, %cst_5 : f32
    %18 = math.rsqrt %17 : f32
    %19 = vector.broadcast %18 : f32 to vector<4x16xf32>
    %20 = arith.mulf %16, %19 : vector<4x16xf32>
    %c0_6 = arith.constant 0 : index
    %c0_7 = arith.constant 0 : index
    %21 = vector.load %arg4[%c0_6, %c0_7] : memref<4x1xf32, #tpu.memory_space<vmem>>, vector<4x1xf32>
    %22 = vector.broadcast %21 : vector<4x1xf32> to vector<4x16xf32>
    %23 = arith.mulf %20, %22 : vector<4x16xf32>
    %c0_8 = arith.constant 0 : index
    %c0_9 = arith.constant 0 : index
    %24 = vector.load %arg5[%c0_8, %c0_9] : memref<4x1xf32, #tpu.memory_space<vmem>>, vector<4x1xf32>
    %25 = vector.broadcast %24 : vector<4x1xf32> to vector<4x16xf32>
    %26 = arith.addf %23, %25 : vector<4x16xf32>
    %27 = arith.negf %26 : vector<4x16xf32>
    %28 = math.exp %27 : vector<4x16xf32>
    %cst_10 = arith.constant 1.000000e+00 : f32
    %29 = vector.broadcast %cst_10 : f32 to vector<4x16xf32>
    %30 = arith.addf %29, %28 : vector<4x16xf32>
    %31 = arith.divf %29, %30 : vector<4x16xf32>
    %32 = arith.mulf %26, %31 : vector<4x16xf32>
    %c0_11 = arith.constant 0 : index
    %c0_12 = arith.constant 0 : index
    %33 = vector.load %arg7[%c0_11, %c0_12] : memref<8x1xf32, #tpu.memory_space<vmem>>, vector<8x1xf32>
    %cst_13 = arith.constant 0.000000e+00 : f32
    %34 = vector.broadcast %cst_13 : f32 to vector<8x16xf32>
    %c0_14 = arith.constant 0 : index
    %c0_15 = arith.constant 0 : index
    %c0_16 = arith.constant 0 : index
    %35 = vector.load %arg6[%c0_14, %c0_15, %c0_16] : memref<3x8x4xf32, #tpu.memory_space<vmem>>, vector<1x8x4xf32>
    %36 = vector.shape_cast %35 : vector<1x8x4xf32> to vector<8x4xf32>
    %cst_17 = arith.constant 0.000000e+00 : f32
    %37 = vector.broadcast %cst_17 : f32 to vector<4x1xf32>
    %38 = vector.extract_strided_slice %32 {offsets = [0, 0], sizes = [4, 15], strides = [1, 1]} : vector<4x16xf32> to vector<4x15xf32>
    %39 = tpu.concatenate %37, %38 in 1 : vector<4x1xf32>, vector<4x15xf32> -> vector<4x16xf32>
    %cst_18 = arith.constant dense<0.000000e+00> : vector<8x16xf32>
    %40 = tpu.matmul %36, %39, %cst_18 {dimension_numbers = #tpu.dot_dimension_numbers<[1], [0], [0], [1], [0, 0, 1, 1], [], []>} : vector<8x4xf32>, vector<4x16xf32>, vector<8x16xf32> -> vector<8x16xf32>
    %41 = arith.addf %34, %40 : vector<8x16xf32>
    %c1 = arith.constant 1 : index
    %c0_19 = arith.constant 0 : index
    %c0_20 = arith.constant 0 : index
    %42 = vector.load %arg6[%c1, %c0_19, %c0_20] : memref<3x8x4xf32, #tpu.memory_space<vmem>>, vector<1x8x4xf32>
    %43 = vector.shape_cast %42 : vector<1x8x4xf32> to vector<8x4xf32>
    %cst_21 = arith.constant dense<0.000000e+00> : vector<8x16xf32>
    %44 = tpu.matmul %43, %32, %cst_21 {dimension_numbers = #tpu.dot_dimension_numbers<[1], [0], [0], [1], [0, 0, 1, 1], [], []>} : vector<8x4xf32>, vector<4x16xf32>, vector<8x16xf32> -> vector<8x16xf32>
    %45 = arith.addf %41, %44 : vector<8x16xf32>
    %c2 = arith.constant 2 : index
    %c0_22 = arith.constant 0 : index
    %c0_23 = arith.constant 0 : index
    %46 = vector.load %arg6[%c2, %c0_22, %c0_23] : memref<3x8x4xf32, #tpu.memory_space<vmem>>, vector<1x8x4xf32>
    %47 = vector.shape_cast %46 : vector<1x8x4xf32> to vector<8x4xf32>
    %cst_24 = arith.constant 0.000000e+00 : f32
    %48 = vector.broadcast %cst_24 : f32 to vector<4x1xf32>
    %49 = vector.extract_strided_slice %32 {offsets = [0, 1], sizes = [4, 15], strides = [1, 1]} : vector<4x16xf32> to vector<4x15xf32>
    %50 = tpu.concatenate %49, %48 in 1 : vector<4x15xf32>, vector<4x1xf32> -> vector<4x16xf32>
    %cst_25 = arith.constant dense<0.000000e+00> : vector<8x16xf32>
    %51 = tpu.matmul %47, %50, %cst_25 {dimension_numbers = #tpu.dot_dimension_numbers<[1], [0], [0], [1], [0, 0, 1, 1], [], []>} : vector<8x4xf32>, vector<4x16xf32>, vector<8x16xf32> -> vector<8x16xf32>
    %52 = arith.addf %45, %51 : vector<8x16xf32>
    %53 = vector.broadcast %33 : vector<8x1xf32> to vector<8x16xf32>
    %54 = arith.addf %52, %53 : vector<8x16xf32>
    %55 = vector.shape_cast %54 : vector<8x16xf32> to vector<1x8x16xf32>
    %cst_26 = arith.constant dense<0.000000e+00> : vector<1xf32>
    %56 = vector.multi_reduction <add>, %55, %cst_26 [1, 2] : vector<1x8x16xf32> to vector<1xf32>
    %57 = vector.shape_cast %56 : vector<1xf32> to vector<1x1x1xf32>
    %58 = vector.extract %57[0, 0, 0] : f32 from vector<1x1x1xf32>
    %cst_27 = arith.constant 1.280000e+02 : f32
    %59 = arith.divf %58, %cst_27 : f32
    %60 = vector.broadcast %59 : f32 to vector<8x16xf32>
    %61 = arith.subf %54, %60 : vector<8x16xf32>
    %62 = arith.mulf %61, %61 : vector<8x16xf32>
    %63 = vector.shape_cast %62 : vector<8x16xf32> to vector<1x8x16xf32>
    %cst_28 = arith.constant dense<0.000000e+00> : vector<1xf32>
    %64 = vector.multi_reduction <add>, %63, %cst_28 [1, 2] : vector<1x8x16xf32> to vector<1xf32>
    %65 = vector.shape_cast %64 : vector<1xf32> to vector<1x1x1xf32>
    %66 = vector.extract %65[0, 0, 0] : f32 from vector<1x1x1xf32>
    %cst_29 = arith.constant 1.280000e+02 : f32
    %67 = arith.divf %66, %cst_29 : f32
    %68 = vector.broadcast %59 : f32 to vector<8x16xf32>
    %69 = arith.subf %54, %68 : vector<8x16xf32>
    %cst_30 = arith.constant 9.99999974E-6 : f32
    %70 = arith.addf %67, %cst_30 : f32
    %71 = math.rsqrt %70 : f32
    %72 = vector.broadcast %71 : f32 to vector<8x16xf32>
    %73 = arith.mulf %69, %72 : vector<8x16xf32>
    %c0_31 = arith.constant 0 : index
    %c0_32 = arith.constant 0 : index
    %74 = vector.load %arg8[%c0_31, %c0_32] : memref<8x1xf32, #tpu.memory_space<vmem>>, vector<8x1xf32>
    %75 = vector.broadcast %74 : vector<8x1xf32> to vector<8x16xf32>
    %76 = arith.mulf %73, %75 : vector<8x16xf32>
    %c0_33 = arith.constant 0 : index
    %c0_34 = arith.constant 0 : index
    %77 = vector.load %arg9[%c0_33, %c0_34] : memref<8x1xf32, #tpu.memory_space<vmem>>, vector<8x1xf32>
    %78 = vector.broadcast %77 : vector<8x1xf32> to vector<8x16xf32>
    %79 = arith.addf %76, %78 : vector<8x16xf32>
    %c0_35 = arith.constant 0 : index
    %c0_36 = arith.constant 0 : index
    %c0_37 = arith.constant 0 : index
    %80 = vector.load %arg2[%c0_35, %c0_36, %c0_37] : memref<1x8x1xf32, #tpu.memory_space<vmem>>, vector<1x8x1xf32>
    %81 = vector.shape_cast %80 : vector<1x8x1xf32> to vector<8x1xf32>
    %cst_38 = arith.constant 1.000000e+00 : f32
    %82 = vector.broadcast %cst_38 : f32 to vector<8x1xf32>
    %83 = arith.addf %81, %82 : vector<8x1xf32>
    %84 = vector.broadcast %83 : vector<8x1xf32> to vector<8x16xf32>
    %85 = arith.mulf %79, %84 : vector<8x16xf32>
    %c0_39 = arith.constant 0 : index
    %c0_40 = arith.constant 0 : index
    %c0_41 = arith.constant 0 : index
    %86 = vector.load %arg3[%c0_39, %c0_40, %c0_41] : memref<1x8x1xf32, #tpu.memory_space<vmem>>, vector<1x8x1xf32>
    %87 = vector.shape_cast %86 : vector<1x8x1xf32> to vector<8x1xf32>
    %88 = vector.broadcast %87 : vector<8x1xf32> to vector<8x16xf32>
    %89 = arith.addf %85, %88 : vector<8x16xf32>
    %90 = arith.negf %89 : vector<8x16xf32>
    %91 = math.exp %90 : vector<8x16xf32>
    %cst_42 = arith.constant 1.000000e+00 : f32
    %92 = vector.broadcast %cst_42 : f32 to vector<8x16xf32>
    %93 = arith.addf %92, %91 : vector<8x16xf32>
    %94 = arith.divf %92, %93 : vector<8x16xf32>
    %95 = arith.mulf %89, %94 : vector<8x16xf32>
    %c0_43 = arith.constant 0 : index
    %c0_44 = arith.constant 0 : index
    %96 = vector.load %arg11[%c0_43, %c0_44] : memref<8x1xf32, #tpu.memory_space<vmem>>, vector<8x1xf32>
    %cst_45 = arith.constant 0.000000e+00 : f32
    %97 = vector.broadcast %cst_45 : f32 to vector<8x16xf32>
    %c0_46 = arith.constant 0 : index
    %c0_47 = arith.constant 0 : index
    %c0_48 = arith.constant 0 : index
    %98 = vector.load %arg10[%c0_46, %c0_47, %c0_48] : memref<3x8x8xf32, #tpu.memory_space<vmem>>, vector<1x8x8xf32>
    %99 = vector.shape_cast %98 : vector<1x8x8xf32> to vector<8x8xf32>
    %cst_49 = arith.constant 0.000000e+00 : f32
    %100 = vector.broadcast %cst_49 : f32 to vector<8x1xf32>
    %101 = vector.extract_strided_slice %95 {offsets = [0, 0], sizes = [8, 15], strides = [1, 1]} : vector<8x16xf32> to vector<8x15xf32>
    %102 = tpu.concatenate %100, %101 in 1 : vector<8x1xf32>, vector<8x15xf32> -> vector<8x16xf32>
    %cst_50 = arith.constant dense<0.000000e+00> : vector<8x16xf32>
    %103 = tpu.matmul %99, %102, %cst_50 {dimension_numbers = #tpu.dot_dimension_numbers<[1], [0], [0], [1], [0, 0, 1, 1], [], []>} : vector<8x8xf32>, vector<8x16xf32>, vector<8x16xf32> -> vector<8x16xf32>
    %104 = arith.addf %97, %103 : vector<8x16xf32>
    %c1_51 = arith.constant 1 : index
    %c0_52 = arith.constant 0 : index
    %c0_53 = arith.constant 0 : index
    %105 = vector.load %arg10[%c1_51, %c0_52, %c0_53] : memref<3x8x8xf32, #tpu.memory_space<vmem>>, vector<1x8x8xf32>
    %106 = vector.shape_cast %105 : vector<1x8x8xf32> to vector<8x8xf32>
    %cst_54 = arith.constant dense<0.000000e+00> : vector<8x16xf32>
    %107 = tpu.matmul %106, %95, %cst_54 {dimension_numbers = #tpu.dot_dimension_numbers<[1], [0], [0], [1], [0, 0, 1, 1], [], []>} : vector<8x8xf32>, vector<8x16xf32>, vector<8x16xf32> -> vector<8x16xf32>
    %108 = arith.addf %104, %107 : vector<8x16xf32>
    %c2_55 = arith.constant 2 : index
    %c0_56 = arith.constant 0 : index
    %c0_57 = arith.constant 0 : index
    %109 = vector.load %arg10[%c2_55, %c0_56, %c0_57] : memref<3x8x8xf32, #tpu.memory_space<vmem>>, vector<1x8x8xf32>
    %110 = vector.shape_cast %109 : vector<1x8x8xf32> to vector<8x8xf32>
    %cst_58 = arith.constant 0.000000e+00 : f32
    %111 = vector.broadcast %cst_58 : f32 to vector<8x1xf32>
    %112 = vector.extract_strided_slice %95 {offsets = [0, 1], sizes = [8, 15], strides = [1, 1]} : vector<8x16xf32> to vector<8x15xf32>
    %113 = tpu.concatenate %112, %111 in 1 : vector<8x15xf32>, vector<8x1xf32> -> vector<8x16xf32>
    %cst_59 = arith.constant dense<0.000000e+00> : vector<8x16xf32>
    %114 = tpu.matmul %110, %113, %cst_59 {dimension_numbers = #tpu.dot_dimension_numbers<[1], [0], [0], [1], [0, 0, 1, 1], [], []>} : vector<8x8xf32>, vector<8x16xf32>, vector<8x16xf32> -> vector<8x16xf32>
    %115 = arith.addf %108, %114 : vector<8x16xf32>
    %116 = vector.broadcast %96 : vector<8x1xf32> to vector<8x16xf32>
    %117 = arith.addf %115, %116 : vector<8x16xf32>
    %c0_60 = arith.constant 0 : index
    %c0_61 = arith.constant 0 : index
    %118 = vector.load %arg12[%c0_60, %c0_61] : memref<8x4xf32, #tpu.memory_space<vmem>>, vector<8x4xf32>
    %cst_62 = arith.constant dense<0.000000e+00> : vector<8x16xf32>
    %119 = tpu.matmul %118, %1, %cst_62 {dimension_numbers = #tpu.dot_dimension_numbers<[1], [0], [0], [1], [0, 0, 1, 1], [], []>} : vector<8x4xf32>, vector<4x16xf32>, vector<8x16xf32> -> vector<8x16xf32>
    %c0_63 = arith.constant 0 : index
    %c0_64 = arith.constant 0 : index
    %120 = vector.load %arg13[%c0_63, %c0_64] : memref<8x1xf32, #tpu.memory_space<vmem>>, vector<8x1xf32>
    %121 = vector.broadcast %120 : vector<8x1xf32> to vector<8x16xf32>
    %122 = arith.addf %119, %121 : vector<8x16xf32>
    %123 = arith.addf %117, %122 : vector<8x16xf32>
    %c0_65 = arith.constant 0 : index
    %c0_66 = arith.constant 0 : index
    %c0_67 = arith.constant 0 : index
    %124 = vector.load %arg14[%c0_65, %c0_66, %c0_67] : memref<1x8x16xf32, #tpu.memory_space<vmem>>, vector<1x8x16xf32>
    %125 = vector.shape_cast %124 : vector<1x8x16xf32> to vector<8x16xf32>
    %126 = vector.shape_cast %123 : vector<8x16xf32> to vector<1x8x16xf32>
    tpu.vector_store %arg14[%c0_65, %c0_66, %c0_67], %126 {strides = array<i32>} : memref<1x8x16xf32, #tpu.memory_space<vmem>>, vector<1x8x16xf32>,
    return
  }
  func.func @transform_0(%arg0: i32) -> (i32, i32, i32) {
    %c0_i32 = arith.constant 0 : i32
    %c0_i32_0 = arith.constant 0 : i32
    %c0_i32_1 = arith.constant 0 : i32
    return %arg0, %c0_i32, %c0_i32_0 : i32, i32, i32
  }
  func.func @transform_1(%arg0: i32) -> (i32, i32, i32) {
    %c0_i32 = arith.constant 0 : i32
    %c0_i32_0 = arith.constant 0 : i32
    %c0_i32_1 = arith.constant 0 : i32
    return %arg0, %c0_i32, %c0_i32_0 : i32, i32, i32
  }
  func.func @transform_2(%arg0: i32) -> (i32, i32, i32) {
    %c0_i32 = arith.constant 0 : i32
    %c0_i32_0 = arith.constant 0 : i32
    %c0_i32_1 = arith.constant 0 : i32
    return %arg0, %c0_i32, %c0_i32_0 : i32, i32, i32
  }
  func.func @transform_3(%arg0: i32) -> (i32, i32) {
    %c0_i32 = arith.constant 0 : i32
    %c0_i32_0 = arith.constant 0 : i32
    %c0_i32_1 = arith.constant 0 : i32
    return %c0_i32, %c0_i32_0 : i32, i32
  }
  func.func @transform_4(%arg0: i32) -> (i32, i32) {
    %c0_i32 = arith.constant 0 : i32
    %c0_i32_0 = arith.constant 0 : i32
    %c0_i32_1 = arith.constant 0 : i32
    return %c0_i32, %c0_i32_0 : i32, i32
  }
  func.func @transform_5(%arg0: i32) -> (i32, i32, i32) {
    %c0_i32 = arith.constant 0 : i32
    %c0_i32_0 = arith.constant 0 : i32
    %c0_i32_1 = arith.constant 0 : i32
    %c0_i32_2 = arith.constant 0 : i32
    return %c0_i32, %c0_i32_0, %c0_i32_1 : i32, i32, i32
  }
  func.func @transform_6(%arg0: i32) -> (i32, i32) {
    %c0_i32 = arith.constant 0 : i32
    %c0_i32_0 = arith.constant 0 : i32
    %c0_i32_1 = arith.constant 0 : i32
    return %c0_i32, %c0_i32_0 : i32, i32
  }
  func.func @transform_7(%arg0: i32) -> (i32, i32) {
    %c0_i32 = arith.constant 0 : i32
    %c0_i32_0 = arith.constant 0 : i32
    %c0_i32_1 = arith.constant 0 : i32
    return %c0_i32, %c0_i32_0 : i32, i32
  }
  func.func @transform_8(%arg0: i32) -> (i32, i32) {
    %c0_i32 = arith.constant 0 : i32
    %c0_i32_0 = arith.constant 0 : i32
    %c0_i32_1 = arith.constant 0 : i32
    return %c0_i32, %c0_i32_0 : i32, i32
  }
  func.func @transform_9(%arg0: i32) -> (i32, i32, i32) {
    %c0_i32 = arith.constant 0 : i32
    %c0_i32_0 = arith.constant 0 : i32
    %c0_i32_1 = arith.constant 0 : i32
    %c0_i32_2 = arith.constant 0 : i32
    return %c0_i32, %c0_i32_0, %c0_i32_1 : i32, i32, i32
  }
  func.func @transform_10(%arg0: i32) -> (i32, i32) {
    %c0_i32 = arith.constant 0 : i32
    %c0_i32_0 = arith.constant 0 : i32
    %c0_i32_1 = arith.constant 0 : i32
    return %c0_i32, %c0_i32_0 : i32, i32
  }
  func.func @transform_11(%arg0: i32) -> (i32, i32) {
    %c0_i32 = arith.constant 0 : i32
    %c0_i32_0 = arith.constant 0 : i32
    %c0_i32_1 = arith.constant 0 : i32
    return %c0_i32, %c0_i32_0 : i32, i32
  }
  func.func @transform_12(%arg0: i32) -> (i32, i32) {
    %c0_i32 = arith.constant 0 : i32
    %c0_i32_0 = arith.constant 0 : i32
    %c0_i32_1 = arith.constant 0 : i32
    return %c0_i32, %c0_i32_0 : i32, i32
  }
  func.func @transform_13(%arg0: i32) -> (i32, i32, i32) {
    %c0_i32 = arith.constant 0 : i32
    %c0_i32_0 = arith.constant 0 : i32
    %c0_i32_1 = arith.constant 0 : i32
    return %arg0, %c0_i32, %c0_i32_0 : i32, i32, i32
  }
}

</mosaic_0001>

<bundles_post_ra>
// kernel: tpu_custom_call.1
= control target key start
LH: loop header
LB: loop body
LE: loop exit
PB: predicated region body
PF: predicated region fallthrough
CT: control target
= control target key end

     0   :  { %s1755_s0 = inlined_call_operand.vmem [shape: f32[2,4,16], index: 0, kind: input, shape index: {}]   ;;  %s1756_s1 = inlined_call_operand.vmem [shape: f32[2,8,1], index: 1, kind: input, shape index: {}]   ;;  %s1757_s2 = inlined_call_operand.vmem [shape: f32[2,8,1], index: 2, kind: input, shape index: {}]   ;;  %s1758_s3 = inlined_call_operand.vmem [shape: f32[4,1], index: 3, kind: input, shape index: {}]   ;;  %s1759_s4 = inlined_call_operand.vmem [shape: f32[4,1], index: 4, kind: input, shape index: {}]   ;;  %s1760_s5 = inlined_call_operand.vmem [shape: f32[3,8,4], index: 5, kind: input, shape index: {}]   ;;  %s1761_s6 = inlined_call_operand.vmem [shape: f32[8,1], index: 6, kind: input, shape index: {}]   ;;  %s1762_s7 = inlined_call_operand.vmem [shape: f32[8,1], index: 7, kind: input, shape index: {}]   ;;  %s1763_s8 = inlined_call_operand.vmem [shape: f32[8,1], index: 8, kind: input, shape index: {}]   ;;  %s1764_s9 = inlined_call_operand.vmem [shape: f32[3,8,8], index: 9, kind: input, shape index: {}]   ;;  %s1765_s10 = inlined_call_operand.vmem [shape: f32[8,1], index: 10, kind: input, shape index: {}]   ;;  %s1766_s11 = inlined_call_operand.vmem [shape: f32[8,4], index: 11, kind: input, shape index: {}]   ;;  %s1767_s12 = inlined_call_operand.vmem [shape: f32[8,1], index: 12, kind: input, shape index: {}]   ;;  %s1768_s13 = inlined_call_operand.hbm [shape: f32[2,8,16], index: 13, kind: output, shape index: {}]  }
   0x1   :  { %1771 = sst [smem:[#allocation5_spill]] %s1755_s0 }
   0x2   :  { %1772 = sst [smem:[#allocation6_spill]] %s1756_s1 }
   0x3   :  { %1773 = sst [smem:[#allocation7_spill]] %s1757_s2 }
   0x4   :  { %1774 = sst [smem:[#allocation8_spill]] %s1758_s3 }
   0x5   :  { %18 = vsyncpa [#allocation3], 0 }
   0x6   :  { %20 = vsyncpa [#allocation3 + $0x1], 0  ;;  %s1566_s25 = smov 0   ;;  %s1568_s26 = smov 0  }
   0x7   :  { %s1570_s27 = smov 0   ;;  %s1572_s28 = smov 0  }
   0x8 LB: > { %s1587_s29 = sadd.s32 4294967295, %s1488_s28   ;;  %s1277_s30 = sadd.s32 4294967294, %s1488_s28   ;;  %s1488_s28 = sphi %s1572_s28, %s1786_s28   ;;  %s1484_s27 = sphi %s1570_s27, %s1785_s27   ;;  %s1480_s26 = sphi %s1568_s26, %s1784_s26   ;;  %s1476_s25 = sphi %s1566_s25, %s1783_s25  }
   0x9   : > { %s1591_s14 = sadd.s32 1, %s1488_s28   ;;  %s321_s15 = sadd.s32 1, %s1484_s27 }
   0xa   : > { %s318_s16 = ssub.s32 %s1488_s28, %s1591_s14  ;;  %p331_p0 = scmp.ne.s32.totalorder %s1484_s27, %s1480_s26 }
   0xb   : > { %p319_p1 = scmp.eq.s32.totalorder %s318_s16, 0  ;;  %p332_p2 = scmp.eq.s32.totalorder %s1587_s29, 1 }
   0xc   : > { %p337_p3 = scmp.ne.s32.totalorder %s1480_s26, %s1476_s25  ;;  %p338_p4 = scmp.eq.s32.totalorder %s1277_s30, 1 }
   0xd   : > { %s1602_s17 = scalar_select %p319_p1, %s1484_s27, %s321_s15  }
   0xe   : > { %p1604_p5 = por %p332_p2, %p331_p0  ;;  %p1608_p6 = por %p338_p4, %p337_p3 }
   0xf   : > { %p1280_p7 = scmp.ge.s32.totalorder %s1488_s28, 1  ;;  %p407_p8 = scmp.lt.s32.totalorder %s1488_s28, 3 }
  0x11   : > { %p408_p9 = pnand %p1280_p7, %p407_p8 }
  0x12   : > { %p458_p10 = scmp.lt.s32.totalorder (!%p408_p9), %s1587_s29, 1  ;;  %s1777_s0 = sld [smem:[#allocation5_spill]] (!%p408_p9) }
  0x13   : > { %411 = sbr.rel (%p408_p9) target bundleno = 1719 (0x6b7), region = 72  ;;  %s1778_s3 = sld [smem:[#allocation8_spill]] (!%p408_p9) }
  0x14   : > { %s1769_s23 = smov (!%p408_p9), 127   ;;  %s1779_s1 = sld [smem:[#allocation6_spill]] (!%p408_p9) }
  0x15   : > { %s1780_s2 = sld [smem:[#allocation7_spill]] (!%p408_p9) }
  0x18   : > { %s1616_s20 = scalar_select %p458_p10, %s1587_s29, 1  ;;  %vm471_vm0 = vcmask 125952   ;;  %v1490_v13 = vmov 0   ;;  %v514_v15 = vld [vmem:[%s1759_s4] sm:$0xf]  ;;  %v1491_v23 = vmov 0.0  }
  0x19   : > { %1414 = vset.pattern.permute.xlu1 %v1490_v13  ;;  %v507_v14 = vld [vmem:[%s1778_s3] sm:$0xf]  ;;  %1415 = vset.pattern.permute.xlu0 %v1490_v13  ;;  %vm1492_vm1 = vmmov 0   ;;  %vm542_vm2 = vcmask 1043456   ;;  %v1286_v37 = vld [vmem:[%s1760_s5 + $0x8] sm:$0xff]  ;;  %vm538_vm3 = vcmask 31744  }
  0x1a   : > { %s1282_s21 = sshll.u32 %s1616_s20, 2  ;;  %510 = vperm.xlu1 %1414, %v507_v14   ;;  %1323 = vmatprep.subr.mxu0 %v1491_v23  ;;  %v528_v38 = vld [vmem:[%s1761_s6] sm:$0xff]  ;;  %vm696_vm4 = vcmask 121856   ;;  %vm534_vm5 = vcmask 7168   ;;  %v1291_v42 = vld [vmem:[%s1760_s5 + $0x10] sm:$0xff]  ;;  %vm781_vm6 = vcmask 130048  }
  0x1b   : > { %s461_s24 = scalar_lea.vmem %s1777_s0, %s1282_s21  ;;  %1328 = vmatprep.subr.mxu1 %v1491_v23  ;;  %1325 = vmatprep.mubr.msk.f32.mxu0 %vm1492_vm1, %v1491_v23  ;;  %v529_v41 = vld [vmem:[%s1760_s5] sm:$0xff]  ;;  %vm862_vm7 = vcmask 64512   ;;  %vm1297_vm8 = vmneg %vm534_vm5  ;;  %s455_s0 = sand.u32 1, %s1480_s26  }
  0x1c   : > { %v1622_v0 = vld [vmem:[%s461_s24] sm:$0xf]  ;;  %1330 = vmatprep.mubr.msk.f32.mxu1 %vm1492_vm1, %v1491_v23 }
  0x1d   : > { %v472_v1 = vsel %vm471_vm0, %v1622_v0, 0.0  ;;  %v817_v56 = vld [vmem:[%s1762_s7] sm:$0xff] }
  0x1e   : > { %473 = vadd.xlane.f32.xlu0 %v472_v1  ;;  %517 = vperm.xlu1 %1414, %v514_v15  }
  0x95   : > { %v511_v26 = vpop.permute.xlu1 %510 }
  0x99   : > { %v518_v30 = vpop.permute.xlu1 %517 }
  0xa7   : > { %v474_v2 = vpop.xlane.xlu0 %473 }
  0xa8   : > { %v475_v3 = vrot.slane %v474_v2, 4 }
  0xaa   : > { %v476_v4 = vadd.f32 %v475_v3, %v474_v2 }
  0xac   : > { %v477_v5 = vrot.slane %v476_v4, 2 }
  0xae   : > { %v478_v6 = vadd.f32 %v477_v5, %v476_v4 }
  0xb0   : > { %v479_v7 = vrot.slane %v478_v6, 1 }
  0xb2   : > { %v480_v8 = vadd.f32 %v479_v7, %v478_v6 }
  0xb4   : > { %1358 = vpush %v480_v8  ;;  %v824_v8 = vld [vmem:[%s1763_s8] sm:$0xff] }
  0xe5   : > { %s1359_s30 = spop %1358 }
  0xe6   : > { %s484_s15 = smul.f32 0.015625, %s1359_s30 }
  0xe8   : > { %v485_v9 = vstv %s484_s15 }
  0xe9   : > { %v486_v10 = vsub.f32 %v1622_v0, %v485_v9 }
  0xeb   : > { %v487_v11 = vmul.f32 %v486_v10, %v486_v10 }
  0xed   : > { %v488_v12 = vsel %vm471_vm0, %v487_v11, 0.0 }
  0xee   : > { %489 = vadd.xlane.f32.xlu0 %v488_v12 }
 0x177   : > { %v490_v16 = vpop.xlane.xlu0 %489 }
 0x178   : > { %v491_v17 = vrot.slane %v490_v16, 4 }
 0x17a   : > { %v492_v18 = vadd.f32 %v491_v17, %v490_v16 }
 0x17c   : > { %v493_v19 = vrot.slane %v492_v18, 2 }
 0x17e   : > { %v494_v20 = vadd.f32 %v493_v19, %v492_v18 }
 0x180   : > { %v495_v21 = vrot.slane %v494_v20, 1 }
 0x182   : > { %v496_v22 = vadd.f32 %v495_v21, %v494_v20 }
 0x184   : > { %1360 = vpush %v496_v22 }
 0x1b5   : > { %s1361_s24 = spop %1360 }
 0x1b6   : > { %s500_s30 = smul.f32 0.015625, %s1361_s24  ;;  %s1770_s24 = smov 1  }
 0x1b8   : > { %s501_s15 = sadd.f32 1e-05, %s500_s30 }
 0x1ba   : > { %v502_v24 = vstv %s501_s15 }
 0x1bb   : > { %1416 = vrsqrt.f32 %v502_v24 }
 0x1c8   : > { %v1417_v25 = vpop.eup %1416 }
 0x1c9   : > { %1362 = vpush %v1417_v25 }
 0x1fa   : > { %s1363_s16 = spop %1362 }
 0x1fb   : > { %v505_v27 = vstv %s1363_s16 }
 0x1fc   : > { %v506_v28 = vmul.f32 %v505_v27, %v486_v10 }
 0x1fe   : > { %v513_v29 = vmul.f32 %v511_v26, %v506_v28 }
 0x200   : > { %v520_v31 = vadd.f32 %v518_v30, %v513_v29 }
 0x202   : > { %v1285_v32 = vmul.f32 -1.442695, %v520_v31 }
 0x204   : > { %1418 = vpow2.f32 %v1285_v32 }
 0x211   : > { %v1419_v33 = vpop.eup %1418 }
 0x212   : > { %v524_v34 = vadd.f32 1.0, %v1419_v33 }
 0x214   : > { %1420 = vrcp.f32 %v524_v34  ;;  %v1295_v34 = vld [vmem:[%s1764_s9 + $0x8] sm:$0xff] }
 0x221   : > { %v1421_v35 = vpop.eup %1420 }
 0x222   : > { %v527_v36 = vmul.f32 %v1421_v35, %v520_v31  ;;  %v853_v35 = vld [vmem:[%s1765_s10] sm:$0xff] }
 0x224   : > { %693 = vrot.lane.b32.xlu1 %v527_v36, %s1769_s23  ;;  %531 = vrot.lane.b32.xlu0 %v527_v36, %s1770_s24  ;;  %s1283_s23 = sshll.u32 %s1616_s20, 3  ;;  %s1281_s24 = sshll.u32 %s455_s0, 3 }
 0x225   : > { %1324 = vmatpush3.msk.msra.mxu0 %vm542_vm2, %v527_v36  ;;  %s465_s16 = scalar_lea.vmem %s1779_s1, %s1283_s23  ;;  %s469_s3 = scalar_lea.vmem %s1780_s2, %s1283_s23  ;;  %v1096_v36 = vld [vmem:[%s1767_s12] sm:$0xff] }
 0x226   : > { %1326 = vmatmul.mubr.msk.f32.vlgmr.msra.gmra.mxu0 %vm538_vm3, %v1286_v37  ;;  %1333 = vmatprep.subr.mxu0 %v1491_v23  ;;  %v831_v57 = vld [vmem:[%s465_s16] sm:$0xff]  ;;  %s1495_s1 = smov [#allocation2]  }
 0x227   : > { %1335 = vmatprep.mubr.msk.f32.mxu0 %vm1492_vm1, %v1491_v23  ;;  %v832_v58 = vadd.f32 1.0, %v831_v57  ;;  %v839_v59 = vld [vmem:[%s469_s3] sm:$0xff] }
 0x228   : > { %777 = vperm.xlu1 %1414, %v528_v38   ;;  %v854_v37 = vld [vmem:[%s1764_s9] sm:$0xff] }
 0x296   : > { %v694_v39 = vpop.permute.xlu1 %693  ;;  %v532_v40 = vpop.permute.xlu0 %531 }
 0x297   : > { %v697_v43 = vsel %vm696_vm4, %v694_v39, 0.0  ;;  %v535_v44 = vsel %vm534_vm5, 0.0, %v532_v40  ;;  %v1300_v39 = vld [vmem:[%s1764_s9 + $0x10] sm:$0xff]  ;;  %v1095_v40 = vld [vmem:[%s1766_s11] sm:$0xff] }
 0x298   : > { %1329 = vmatpush3.msk.msra.mxu1 %vm542_vm2, %v535_v44  ;;  %1334 = vmatpush3.msk.msra.mxu0 %vm542_vm2, %v697_v43 }
 0x299   : > { %1331 = vmatmul.mubr.msk.f32.vlgmr.msra.gmra.mxu1 %vm538_vm3, %v529_v41  ;;  %1336 = vmatmul.mubr.msk.f32.vlgmr.msra.gmra.mxu0 %vm538_vm3, %v1291_v42 }
 0x29a   : > { %1338 = vmatprep.subr.mxu1 %v1491_v23  ;;  %1343 = vmatprep.subr.mxu0 %v1491_v23 }
 0x29b   : > { %1340 = vmatprep.mubr.msk.f32.mxu1 %vm1492_vm1, %v1491_v23  ;;  %1345 = vmatprep.mubr.msk.f32.mxu0 %vm1492_vm1, %v1491_v23 }
 0x2a3   : > { %v778_v53 = vpop.permute.xlu1 %777 }
 0x2e6   : > { %v611_v45 = vpop.f32.mrf.mxu0 }
 0x2e8   : > { %v1327_v46 = vpop.f32.mrf.mxu0 }
 0x359   : > { %v687_v47 = vpop.f32.mrf.mxu1  ;;  %v770_v48 = vpop.f32.mrf.mxu0 }
 0x35a   : > { %v688_v49 = vadd.f32 %v687_v47, %v611_v45 }
 0x35b   : > { %v1332_v50 = vpop.f32.mrf.mxu1  ;;  %v1337_v51 = vpop.f32.mrf.mxu0 }
 0x35c   : > { %v774_v52 = vadd.f32 %v770_v48, %v688_v49 }
 0x35e   : > { %v780_v54 = vadd.f32 %v778_v53, %v774_v52 }
 0x360   : > { %v782_v55 = vsel %vm781_vm6, %v780_v54, 0.0 }
 0x361   : > { %783 = vadd.xlane.f32.xlu1 %v782_v55 }
 0x372   : > { %820 = vperm.xlu1 %1414, %v817_v56  }
 0x376   : > { %835 = vperm.xlu1 %1414, %v832_v58  }
 0x37a   : > { %842 = vperm.xlu1 %1414, %v839_v59  }
 0x3ea   : > { %v784_v60 = vpop.xlane.xlu1 %783 }
 0x3eb   : > { %v785_v61 = vrot.slane %v784_v60, 4 }
 0x3ed   : > { %v786_v62 = vadd.f32 %v785_v61, %v784_v60 }
 0x3ee   : > { %v821_v18 = vpop.permute.xlu1 %820 }
 0x3ef   : > { %v787_v63 = vrot.slane %v786_v62, 2 }
 0x3f1   : > { %v788_v1 = vadd.f32 %v787_v63, %v786_v62 }
 0x3f2   : > { %v836_v21 = vpop.permute.xlu1 %835 }
 0x3f3   : > { %v789_v2 = vrot.slane %v788_v1, 1 }
 0x3f5   : > { %v790_v3 = vadd.f32 %v789_v2, %v788_v1 }
 0x3f6   : > { %v843_v27 = vpop.permute.xlu1 %842 }
 0x3f7   : > { %1364 = vpush %v790_v3 }
 0x428   : > { %s1365_s20 = spop %1364 }
 0x429   : > { %s794_s30 = smul.f32 0.0078125, %s1365_s20  ;;  %s1781_s20 = smov 1  }
 0x42b   : > { %v795_v4 = vstv %s794_s30  ;;  %s1782_s30 = smov 127  }
 0x42c   : > { %v796_v5 = vsub.f32 %v780_v54, %v795_v4 }
 0x42e   : > { %v797_v6 = vmul.f32 %v796_v5, %v796_v5 }
 0x430   : > { %v798_v7 = vsel %vm781_vm6, %v797_v6, 0.0 }
 0x431   : > { %799 = vadd.xlane.f32.xlu0 %v798_v7 }
 0x447   : > { %827 = vperm.xlu0 %1415, %v824_v8  }
 0x4ba   : > { %v800_v9 = vpop.xlane.xlu0 %799 }
 0x4bb   : > { %v801_v10 = vrot.slane %v800_v9, 4 }
 0x4bd   : > { %v802_v11 = vadd.f32 %v801_v10, %v800_v9 }
 0x4bf   : > { %v803_v12 = vrot.slane %v802_v11, 2 }
 0x4c1   : > { %v804_v13 = vadd.f32 %v803_v12, %v802_v11 }
 0x4c2   : > { %v828_v22 = vpop.permute.xlu0 %827 }
 0x4c3   : > { %v805_v14 = vrot.slane %v804_v13, 1 }
 0x4c5   : > { %v806_v15 = vadd.f32 %v805_v14, %v804_v13 }
 0x4c7   : > { %1366 = vpush %v806_v15 }
 0x4f8   : > { %s1367_s3 = spop %1366 }
 0x4f9   : > { %s810_s23 = smul.f32 0.0078125, %s1367_s3  ;;  %s1306_s3 = sshll.u32 %s1587_s29, 7 }
 0x4fa   : > { %s1192_s22 = scalar_lea.hbm %s1768_s13, %s1306_s3  ;;  %s1432_s29 = sshll.u32 %s1495_s1, 4  ;;  %s1433_s29 = int_to_ptr.vmem [resolvable:$false] %s1432_s29 }
 0x4fb   : > { %s811_s15 = sadd.f32 1e-05, %s810_s23  ;;  %s457_s23 = scalar_lea.vmem [#allocation2], %s1281_s24 }
 0x4fc   : > { %s1434_s24 = scalar_lea.vmem %s1433_s29, 256 }
 0x4fd   : > { %v812_v16 = vstv %s811_s15  ;;  %s1194_s15 = sshll.u32 %s457_s23, 4  ;;  %s1195_s15 = int_to_ptr.vmem [resolvable:$true] %s1194_s15 }
 0x4fe   : > { %1422 = vrsqrt.f32 %v812_v16  ;;  %p1435_p0 = scmp.lt.s32.totalorder %s1195_s15, %s1433_s29 }
 0x50b   : > { %v1423_v17 = vpop.eup %1422 }
 0x50c   : > { %1368 = vpush %v1423_v17 }
 0x53d   : > { %s1369_s16 = spop %1368 }
 0x53e   : > { %v815_v19 = vstv %s1369_s16 }
 0x53f   : > { %v816_v20 = vmul.f32 %v815_v19, %v796_v5 }
 0x541   : > { %v823_v24 = vmul.f32 %v821_v18, %v816_v20 }
 0x543   : > { %v830_v25 = vadd.f32 %v828_v22, %v823_v24 }
 0x545   : > { %v838_v26 = vmul.f32 %v836_v21, %v830_v25 }
 0x547   : > { %v845_v28 = vadd.f32 %v843_v27, %v838_v26 }
 0x549   : > { %v1294_v29 = vmul.f32 -1.442695, %v845_v28 }
 0x54b   : > { %1424 = vpow2.f32 %v1294_v29 }
 0x558   : > { %v1425_v30 = vpop.eup %1424 }
 0x559   : > { %v849_v31 = vadd.f32 1.0, %v1425_v30 }
 0x55b   : > { %1426 = vrcp.f32 %v849_v31 }
 0x568   : > { %v1427_v32 = vpop.eup %1426 }
 0x569   : > { %v852_v33 = vmul.f32 %v1427_v32, %v845_v28 }
 0x56b   : > { %856 = vrot.lane.b32.xlu1 %v852_v33, %s1781_s20  ;;  %1339 = vmatpush3.msra.mxu1 %v852_v33  ;;  %s1181_s20 = scalar_lea.sflag [#allocation3], %s455_s0 }
 0x56c   : > { %1341 = vmatmul.mubr.msk.f32.vlgmr.msra.gmra.mxu1 %vm862_vm7, %v1295_v34  ;;  %1348 = vmatprep.subr.mxu1 %v1491_v23 }
 0x56d   : > { %1350 = vmatprep.mubr.msk.f32.mxu1 %vm1492_vm1, %v1491_v23 }
 0x56f   : > { %1011 = vrot.lane.b32.xlu1 %v852_v33, %s1782_s30  ;;  %s1428_s30 = scalar_lea.vmem %s1195_s15, 128 }
 0x570   : > { %p1429_p11 = scmp.ne.s32.totalorder %s1195_s15, %s1428_s30  ;;  %p1436_p1 = scmp.lt.s32.totalorder %s1434_s24, %s1428_s30 }
 0x572   : > { %p1430_p12 = pnand %p1429_p11, %p1604_p5  ;;  %p1437_p2 = por %p1436_p1, %p1435_p0 }
 0x573   : > { %1091 = vperm.xlu1 %1414, %v853_v35  }
 0x574   : > { %p1431_p13 = pneg %p1430_p12 }
 0x576   : > { %p1438_p3 = pnand %p1437_p2, %p1431_p13 }
 0x577   : > { %1099 = vperm.xlu1 %1414, %v1096_v36  }
 0x5dd   : > { %v857_v38 = vpop.permute.xlu1 %856 }
 0x5de   : > { %1344 = vmatpush3.msk.msra.mxu0 %vm1297_vm8, %v857_v38 }
 0x5df   : > { %1346 = vmatmul.mubr.msk.f32.vlgmr.msra.gmra.mxu0 %vm862_vm7, %v854_v37  ;;  %1353 = vmatprep.subr.mxu0 %v1491_v23 }
 0x5e0   : > { %1354 = vmatpush3.msk.msra.mxu0 %vm542_vm2, %v1622_v0  ;;  %1355 = vmatprep.mubr.msk.f32.mxu0 %vm1492_vm1, %v1491_v23 }
 0x5e1   : > { %v1012_v41 = vpop.permute.xlu1 %1011 }
 0x5e2   : > { %1349 = vmatpush3.msk.msra.mxu1 %vm696_vm4, %v1012_v41 }
 0x5e3   : > { %1351 = vmatmul.mubr.msk.f32.vlgmr.msra.gmra.mxu1 %vm862_vm7, %v1300_v39  ;;  %1356 = vmatmul.mubr.msk.f32.vlgmr.msra.gmra.mxu0 %vm538_vm3, %v1095_v40 }
 0x5ee   : > { %v1092_v23 = vpop.permute.xlu1 %1091 }
 0x5f2   : > { %v1100_v48 = vpop.permute.xlu1 %1099 }
 0x62c   : > { %v932_v0 = vpop.f32.mrf.mxu1 }
 0x62e   : > { %v1342_v42 = vpop.f32.mrf.mxu1 }
 0x69f   : > { %v1005_v43 = vpop.f32.mrf.mxu0 }
 0x6a0   : > { %v1006_v45 = vadd.f32 %v1005_v43, %v932_v0 }
 0x6a1   : > { %v1347_v44 = vpop.f32.mrf.mxu0 }
 0x6a3   : > { %v1084_v46 = vpop.f32.mrf.mxu1  ;;  %v1174_v47 = vpop.f32.mrf.mxu0 }
 0x6a4   : > { %v1088_v49 = vadd.f32 %v1084_v46, %v1006_v45  ;;  %v1175_v53 = vadd.f32 %v1174_v47, %v1100_v48 }
 0x6a5   : > { %v1352_v50 = vpop.f32.mrf.mxu1  ;;  %v1357_v51 = vpop.f32.mrf.mxu0 }
 0x6a6   : > { %v1094_v52 = vadd.f32 %v1092_v23, %v1088_v49 }
 0x6a8   : > { %v1178_v54 = vadd.f32 %v1175_v53, %v1094_v52 }
 0x6aa   : > { %1179 = vst.msk [vmem:[%s457_s23] sm:$0xff] %vm781_vm6, %v1178_v54 }
 0x6ab   : > { %1441 = shalt.err (!%p1438_p3)
}
 0x6ac   : > { %s1442_s16 = scalar_lea.hbm %s1192_s22, 128  ;;  %s1446_s23 = scalar_lea.hbm %s1768_s13, 256 }
 0x6ad   : > { %p1443_p4 = scmp.ne.s32.totalorder %s1192_s22, %s1442_s16  ;;  %p1447_p9 = scmp.lt.s32.totalorder %s1192_s22, %s1768_s13 }
 0x6ae   : > { %p1448_p10 = scmp.lt.s32.totalorder %s1446_s23, %s1442_s16 }
 0x6af   : > { %p1444_p7 = pnand %p1443_p4, %p1604_p5 }
 0x6b0   : > { %p1449_p11 = por %p1448_p10, %p1447_p9 }
 0x6b1   : > { %p1445_p8 = pneg %p1444_p7 }
 0x6b3   : > { %p1450_p12 = pnand %p1449_p11, %p1445_p8 }
 0x6b5   : > { %1453 = shalt.err (!%p1450_p12)
}
 0x6b6   : > { %1370 = dma.vmem_to_hbm [thread:$0]  (%p1604_p5), %s1195_s15, 128, %s1192_s22, %s1181_s20  }
 0x6b7 PF: > { %p1376_p13 = scmp.ge.s32.totalorder %s1488_s28, 2  ;;  %s1206_s1 = sand.u32 1, %s1476_s25  }
 0x6b8   : > { %s1207_s30 = scalar_lea.sflag [#allocation3], %s1206_s1 }
 0x6b9   : > { %p1373_p0 = pnand %p1376_p13, %p1608_p6 }
 0x6bb   : > { %p1374_p1 = pneg %p1373_p0 }
 0x6bd   : > { %1471 = dma.done.wait (%p1374_p1), %s1207_s30, 128  }
 0x6be   : > { %1473 = vsyncadd (%p1374_p1), %s1207_s30, 4294967168  ;;  %p23_p2 = scmp.ge.s32.totalorder %s1591_s14, 4   ;;  %s1783_s25 = smov %s1480_s26 }
 0x6bf   : > { %s1784_s26 = smov %s1484_s27  ;;  %s1785_s27 = smov %s1602_s17 }
 0x6c0   : > { %s1786_s28 = smov %s1591_s14  ;;  %25 = sbr.rel (!%p23_p2) target bundleno = 8 (0x8), region = 117 }
 0x6c5   :  { %1212 = vsyncpa [#allocation3], 1 }
 0x6c6   :  { %1214 = vsyncpa [#allocation3 + $0x1], 1 }

</bundles_post_ra>
